<compile_context>
chip_gen: v5e
topology: v5e:2x2
jax: 0.10.0
libtpu: 0.0.40
codegen_flags: <defaults>
</compile_context>

<pallas_src>
import jax
import jax.numpy as jnp
from jax.experimental import pallas as pl
from jax.experimental.pallas import tpu as pltpu


# ---------------------------------------------------------------------------
# Fused Pallas kernel: base MLP (step 0, VMEM-resident feature) + one head/step
# ---------------------------------------------------------------------------

def fused_bootstrapped_kernel(idxs_ref,                      # scalar-prefetch (SMEM), used by index_maps
                              x_ref, w1_ref, b1_ref, w2_ref, b2_ref,
                              wh_ref, bh_ref, wl_ref, bl_ref,
                              o_ref, feat_ref):
    # --- base MLP: computed once, feature stays resident in VMEM scratch -----
    @pl.when(pl.program_id(0) == 0)
    def _():
        h = jnp.dot(x_ref[...], w1_ref[...], preferred_element_type=jnp.float32)
        h = jnp.maximum(h + b1_ref[...], 0.0)
        h = jnp.dot(h, w2_ref[...], preferred_element_type=jnp.float32)
        feat_ref[...] = jnp.maximum(h + b2_ref[...], 0.0)

    # --- one bootstrapped head per grid step ---------------------------------
    f = feat_ref[...]
    h = jnp.dot(f, wh_ref[0], preferred_element_type=jnp.float32)
    h = jnp.maximum(h + bh_ref[0], 0.0)
    o_ref[0] = jnp.dot(h, wl_ref[0], preferred_element_type=jnp.float32) + bl_ref[0]


# ---------------------------------------------------------------------------
# Wrapper: one pallas_call for the whole forward, jitted.
# ---------------------------------------------------------------------------

def _forward_impl(x, w1, b1, w2, b2, wh_all, bh_all, wl_all, bl_all, head_idxs):
    B = x.shape[0]
    h2 = w2.shape[1]
    out_dim = wl_all.shape[-1]
    n_sel = head_idxs.shape[0]

    # Pad batch rows to a multiple of 8 for sublane-aligned loads/stores.
    # Zero rows are harmless (row-wise math only) and sliced off afterwards.
    B_pad = ((B + 7) // 8) * 8
    if B_pad != B:
        x = jnp.pad(x, ((0, B_pad - B), (0, 0)))

    grid_spec = pltpu.PrefetchScalarGridSpec(
        num_scalar_prefetch=1,
        grid=(n_sel,),
        in_specs=[
            # base inputs: constant block index -> DMA'd once, stay in VMEM
            pl.BlockSpec(x.shape,  lambda i, idxs: (0, 0)),
            pl.BlockSpec(w1.shape, lambda i, idxs: (0, 0)),
            pl.BlockSpec(b1.shape, lambda i, idxs: (0, 0)),
            pl.BlockSpec(w2.shape, lambda i, idxs: (0, 0)),
            pl.BlockSpec(b2.shape, lambda i, idxs: (0, 0)),
            # stacked head params: data-dependent head selection via prefetched idxs
            pl.BlockSpec((1,) + wh_all.shape[1:], lambda i, idxs: (idxs[i], 0, 0)),
            pl.BlockSpec((1,) + bh_all.shape[1:], lambda i, idxs: (idxs[i], 0, 0)),
            pl.BlockSpec((1,) + wl_all.shape[1:], lambda i, idxs: (idxs[i], 0, 0)),
            pl.BlockSpec((1,) + bl_all.shape[1:], lambda i, idxs: (idxs[i], 0, 0)),
        ],
        out_specs=pl.BlockSpec((1, B_pad, out_dim), lambda i, idxs: (i, 0, 0)),
        scratch_shapes=[pltpu.VMEM((B_pad, h2), jnp.float32)],  # resident feature
    )

    out = pl.pallas_call(
        fused_bootstrapped_kernel,
        out_shape=jax.ShapeDtypeStruct((n_sel, B_pad, out_dim), jnp.float32),
        grid_spec=grid_spec,
        # Head axis carries the feature scratch from step 0 -> must be sequential.
        compiler_params=pltpu.CompilerParams(dimension_semantics=("arbitrary",)),
    )(head_idxs, x, w1, b1, w2, b2, wh_all, bh_all, wl_all, bl_all)

    return out[:, :B, :]   # [n_sel, B, out_dim]


_forward_jit = jax.jit(_forward_impl)


# ---------------------------------------------------------------------------
# BootstrappedNet in JAX
# ---------------------------------------------------------------------------

class BootstrappedNetPallas:
    def __init__(self, key, input_shape, output_shape,
                 base_hidden_shapes=(32, 32), head_num=10,
                 append_hidden_shapes=(32,)):
        # --- base MLP params (basic_init ~ small deterministic normal) ---
        assert len(append_hidden_shapes) == 1  # one appended hidden layer per head
        keys = jax.random.split(key, 2 + head_num * 3)
        h1, h2 = base_hidden_shapes
        self.w1 = jax.random.normal(keys[0], (input_shape, h1), jnp.float32) * 0.1
        self.b1 = jnp.zeros((1, h1), jnp.float32)
        self.w2 = jax.random.normal(keys[1], (h1, h2), jnp.float32) * 0.1
        self.b2 = jnp.zeros((1, h2), jnp.float32)
        self.base_output_shape = h2

        # --- heads, stacked along a leading head axis -----------------------
        ah = append_hidden_shapes[0]
        wh_list, bh_list, wl_list, bl_list = [], [], [], []
        k = 2
        for _ in range(head_num):
            wh_list.append(jax.random.normal(keys[k], (h2, ah), jnp.float32) * 0.1)   # basic_init
            bh_list.append(jnp.zeros((1, ah), jnp.float32))
            wl_list.append(jax.random.uniform(keys[k + 1], (ah, output_shape),        # uniform_init
                                              jnp.float32, minval=-3e-3, maxval=3e-3))
            bl_list.append(jax.random.uniform(keys[k + 2], (1, output_shape),
                                              jnp.float32, minval=-3e-3, maxval=3e-3))
            k += 3
        self.wh_all = jnp.stack(wh_list)   # [head_num, h2, ah]
        self.bh_all = jnp.stack(bh_list)   # [head_num, 1, ah]
        self.wl_all = jnp.stack(wl_list)   # [head_num, ah, out]
        self.bl_all = jnp.stack(bl_list)   # [head_num, 1, out]

    def forward(self, x, head_idxs):
        idxs = jnp.asarray(head_idxs, dtype=jnp.int32)
        stacked = _forward_jit(x, self.w1, self.b1, self.w2, self.b2,
                               self.wh_all, self.bh_all, self.wl_all, self.bl_all,
                               idxs)
        # match the PyTorch forward: a Python list, one output per requested head
        return [stacked[j] for j in range(len(head_idxs))]


# ---------------------------------------------------------------------------
# Pure-JAX reference for correctness check
# ---------------------------------------------------------------------------

def reference_forward(net, x, head_idxs):
    f = jnp.maximum(x @ net.w1 + net.b1, 0.0)
    f = jnp.maximum(f @ net.w2 + net.b2, 0.0)
    outs = []
    for idx in head_idxs:
        h = jnp.maximum(f @ net.wh_all[idx] + net.bh_all[idx], 0.0)
        outs.append(h @ net.wl_all[idx] + net.bl_all[idx])
    return outs


if __name__ == "__main__":
    key = jax.random.PRNGKey(0)
    k_param, k_x = jax.random.split(key)

    batch = 4
    in_features = 16
    output_shape = 8
    head_idxs = [0, 3, 7]

    net = BootstrappedNetPallas(
        k_param,
        input_shape=in_features,
        output_shape=output_shape,
        base_hidden_shapes=(32, 32),
        head_num=10,
        append_hidden_shapes=(32,),
    )

    x = jax.random.normal(k_x, (batch, in_features), jnp.float32)

    outs = net.forward(x, head_idxs)
    outs = [jax.block_until_ready(o) for o in outs]

    # verify against pure-JAX reference
    refs = reference_forward(net, x, head_idxs)
    for o, r in zip(outs, refs):
        assert o.shape == (batch, output_shape)
        assert jnp.allclose(o, r, atol=1e-5, rtol=1e-5)

    print("KERNEL_OK")
</pallas_src>

<mosaic_0001>
module attributes {stable_mosaic.version = 11 : i64} {
  func.func @fused_bootstrapped_kernel(%arg0: i32, %arg1: memref<3xi32, #tpu.memory_space<smem>>, %arg2: memref<8x16xf32, #tpu.memory_space<vmem>>, %arg3: memref<16x32xf32, #tpu.memory_space<vmem>>, %arg4: memref<1x32xf32, #tpu.memory_space<vmem>>, %arg5: memref<32x32xf32, #tpu.memory_space<vmem>>, %arg6: memref<1x32xf32, #tpu.memory_space<vmem>>, %arg7: memref<1x32x32xf32, #tpu.memory_space<vmem>>, %arg8: memref<1x1x32xf32, #tpu.memory_space<vmem>>, %arg9: memref<1x32x8xf32, #tpu.memory_space<vmem>>, %arg10: memref<1x1x8xf32, #tpu.memory_space<vmem>>, %arg11: memref<1x8x8xf32, #tpu.memory_space<vmem>>, %arg12: memref<8x32xf32, #tpu.memory_space<vmem>>) attributes {dimension_semantics = [#tpu.dimension_semantics<arbitrary>], iteration_bounds = array<i64: 3>, scalar_prefetch = 1 : i64, scratch_operands = 1 : i64, tpu.core_type = #tpu.core_type<tc>, window_params = [{pipeline_mode = #tpu.pipeline_mode<synchronous>, transform_indices = @transform_0, window_bounds = array<i64: 8, 16>}, {pipeline_mode = #tpu.pipeline_mode<synchronous>, transform_indices = @transform_1, window_bounds = array<i64: 16, 32>}, {pipeline_mode = #tpu.pipeline_mode<synchronous>, transform_indices = @transform_2, window_bounds = array<i64: 1, 32>}, {pipeline_mode = #tpu.pipeline_mode<synchronous>, transform_indices = @transform_3, window_bounds = array<i64: 32, 32>}, {pipeline_mode = #tpu.pipeline_mode<synchronous>, transform_indices = @transform_4, window_bounds = array<i64: 1, 32>}, {transform_indices = @transform_5, window_bounds = array<i64: 1, 32, 32>}, {transform_indices = @transform_6, window_bounds = array<i64: 1, 1, 32>}, {transform_indices = @transform_7, window_bounds = array<i64: 1, 32, 8>}, {transform_indices = @transform_8, window_bounds = array<i64: 1, 1, 8>}, {transform_indices = @transform_9, window_bounds = array<i64: 1, 8, 8>}]} {
    %c0_i32 = arith.constant 0 : i32
    %0 = arith.cmpi eq, %arg0, %c0_i32 : i32
    %1 = arith.extui %0 : i1 to i32
    %c0_i32_0 = arith.constant 0 : i32
    %2 = arith.cmpi ne, %1, %c0_i32_0 : i32
    scf.if %2 {
      %c0_19 = arith.constant 0 : index
      %c0_20 = arith.constant 0 : index
      %23 = vector.load %arg2[%c0_19, %c0_20] : memref<8x16xf32, #tpu.memory_space<vmem>>, vector<8x16xf32>
      %c0_21 = arith.constant 0 : index
      %c0_22 = arith.constant 0 : index
      %24 = vector.load %arg3[%c0_21, %c0_22] : memref<16x32xf32, #tpu.memory_space<vmem>>, vector<16x32xf32>
      %cst_23 = arith.constant dense<0.000000e+00> : vector<8x32xf32>
      %25 = tpu.matmul %23, %24, %cst_23 {dimension_numbers = #tpu.dot_dimension_numbers<[1], [0], [0], [1], [0, 0, 1, 1], [], []>} : vector<8x16xf32>, vector<16x32xf32>, vector<8x32xf32> -> vector<8x32xf32>
      %c0_24 = arith.constant 0 : index
      %c0_25 = arith.constant 0 : index
      %26 = vector.load %arg4[%c0_24, %c0_25] : memref<1x32xf32, #tpu.memory_space<vmem>>, vector<1x32xf32>
      %27 = vector.broadcast %26 : vector<1x32xf32> to vector<8x32xf32>
      %28 = arith.addf %25, %27 : vector<8x32xf32>
      %cst_26 = arith.constant 0.000000e+00 : f32
      %29 = vector.broadcast %cst_26 : f32 to vector<8x32xf32>
      %30 = arith.maximumf %28, %29 : vector<8x32xf32>
      %c0_27 = arith.constant 0 : index
      %c0_28 = arith.constant 0 : index
      %31 = vector.load %arg5[%c0_27, %c0_28] : memref<32x32xf32, #tpu.memory_space<vmem>>, vector<32x32xf32>
      %cst_29 = arith.constant dense<0.000000e+00> : vector<8x32xf32>
      %32 = tpu.matmul %30, %31, %cst_29 {dimension_numbers = #tpu.dot_dimension_numbers<[1], [0], [0], [1], [0, 0, 1, 1], [], []>} : vector<8x32xf32>, vector<32x32xf32>, vector<8x32xf32> -> vector<8x32xf32>
      %c0_30 = arith.constant 0 : index
      %c0_31 = arith.constant 0 : index
      %33 = vector.load %arg6[%c0_30, %c0_31] : memref<1x32xf32, #tpu.memory_space<vmem>>, vector<1x32xf32>
      %34 = vector.broadcast %33 : vector<1x32xf32> to vector<8x32xf32>
      %35 = arith.addf %32, %34 : vector<8x32xf32>
      %cst_32 = arith.constant 0.000000e+00 : f32
      %36 = vector.broadcast %cst_32 : f32 to vector<8x32xf32>
      %37 = arith.maximumf %35, %36 : vector<8x32xf32>
      %c0_33 = arith.constant 0 : index
      %c0_34 = arith.constant 0 : index
      %38 = vector.load %arg12[%c0_33, %c0_34] : memref<8x32xf32, #tpu.memory_space<vmem>>, vector<8x32xf32>
      tpu.vector_store %arg12[%c0_33, %c0_34], %37 {strides = array<i32>} : memref<8x32xf32, #tpu.memory_space<vmem>>, vector<8x32xf32>,
    } else {
    }
    %c0 = arith.constant 0 : index
    %c0_1 = arith.constant 0 : index
    %3 = vector.load %arg12[%c0, %c0_1] : memref<8x32xf32, #tpu.memory_space<vmem>>, vector<8x32xf32>
    %c0_2 = arith.constant 0 : index
    %c0_3 = arith.constant 0 : index
    %c0_4 = arith.constant 0 : index
    %4 = vector.load %arg7[%c0_2, %c0_3, %c0_4] : memref<1x32x32xf32, #tpu.memory_space<vmem>>, vector<1x32x32xf32>
    %5 = vector.shape_cast %4 : vector<1x32x32xf32> to vector<32x32xf32>
    %cst = arith.constant dense<0.000000e+00> : vector<8x32xf32>
    %6 = tpu.matmul %3, %5, %cst {dimension_numbers = #tpu.dot_dimension_numbers<[1], [0], [0], [1], [0, 0, 1, 1], [], []>} : vector<8x32xf32>, vector<32x32xf32>, vector<8x32xf32> -> vector<8x32xf32>
    %c0_5 = arith.constant 0 : index
    %c0_6 = arith.constant 0 : index
    %c0_7 = arith.constant 0 : index
    %7 = vector.load %arg8[%c0_5, %c0_6, %c0_7] : memref<1x1x32xf32, #tpu.memory_space<vmem>>, vector<1x1x32xf32>
    %8 = vector.shape_cast %7 : vector<1x1x32xf32> to vector<1x32xf32>
    %9 = vector.broadcast %8 : vector<1x32xf32> to vector<8x32xf32>
    %10 = arith.addf %6, %9 : vector<8x32xf32>
    %cst_8 = arith.constant 0.000000e+00 : f32
    %11 = vector.broadcast %cst_8 : f32 to vector<8x32xf32>
    %12 = arith.maximumf %10, %11 : vector<8x32xf32>
    %c0_9 = arith.constant 0 : index
    %c0_10 = arith.constant 0 : index
    %c0_11 = arith.constant 0 : index
    %13 = vector.load %arg9[%c0_9, %c0_10, %c0_11] : memref<1x32x8xf32, #tpu.memory_space<vmem>>, vector<1x32x8xf32>
    %14 = vector.shape_cast %13 : vector<1x32x8xf32> to vector<32x8xf32>
    %cst_12 = arith.constant dense<0.000000e+00> : vector<8x8xf32>
    %15 = tpu.matmul %12, %14, %cst_12 {dimension_numbers = #tpu.dot_dimension_numbers<[1], [0], [0], [1], [0, 0, 1, 1], [], []>} : vector<8x32xf32>, vector<32x8xf32>, vector<8x8xf32> -> vector<8x8xf32>
    %c0_13 = arith.constant 0 : index
    %c0_14 = arith.constant 0 : index
    %c0_15 = arith.constant 0 : index
    %16 = vector.load %arg10[%c0_13, %c0_14, %c0_15] : memref<1x1x8xf32, #tpu.memory_space<vmem>>, vector<1x1x8xf32>
    %17 = vector.shape_cast %16 : vector<1x1x8xf32> to vector<1x8xf32>
    %18 = vector.broadcast %17 : vector<1x8xf32> to vector<8x8xf32>
    %19 = arith.addf %15, %18 : vector<8x8xf32>
    %c0_16 = arith.constant 0 : index
    %c0_17 = arith.constant 0 : index
    %c0_18 = arith.constant 0 : index
    %20 = vector.load %arg11[%c0_16, %c0_17, %c0_18] : memref<1x8x8xf32, #tpu.memory_space<vmem>>, vector<1x8x8xf32>
    %21 = vector.shape_cast %20 : vector<1x8x8xf32> to vector<8x8xf32>
    %22 = vector.shape_cast %19 : vector<8x8xf32> to vector<1x8x8xf32>
    tpu.vector_store %arg11[%c0_16, %c0_17, %c0_18], %22 {strides = array<i32>} : memref<1x8x8xf32, #tpu.memory_space<vmem>>, vector<1x8x8xf32>,
    return
  }
  func.func @transform_0(%arg0: i32, %arg1: memref<3xi32, #tpu.memory_space<smem>>) -> (i32, i32) {
    %c0_i32 = arith.constant 0 : i32
    %c0_i32_0 = arith.constant 0 : i32
    %c0_i32_1 = arith.constant 0 : i32
    return %c0_i32, %c0_i32_0 : i32, i32
  }
  func.func @transform_1(%arg0: i32, %arg1: memref<3xi32, #tpu.memory_space<smem>>) -> (i32, i32) {
    %c0_i32 = arith.constant 0 : i32
    %c0_i32_0 = arith.constant 0 : i32
    %c0_i32_1 = arith.constant 0 : i32
    return %c0_i32, %c0_i32_0 : i32, i32
  }
  func.func @transform_2(%arg0: i32, %arg1: memref<3xi32, #tpu.memory_space<smem>>) -> (i32, i32) {
    %c0_i32 = arith.constant 0 : i32
    %c0_i32_0 = arith.constant 0 : i32
    %c0_i32_1 = arith.constant 0 : i32
    return %c0_i32, %c0_i32_0 : i32, i32
  }
  func.func @transform_3(%arg0: i32, %arg1: memref<3xi32, #tpu.memory_space<smem>>) -> (i32, i32) {
    %c0_i32 = arith.constant 0 : i32
    %c0_i32_0 = arith.constant 0 : i32
    %c0_i32_1 = arith.constant 0 : i32
    return %c0_i32, %c0_i32_0 : i32, i32
  }
  func.func @transform_4(%arg0: i32, %arg1: memref<3xi32, #tpu.memory_space<smem>>) -> (i32, i32) {
    %c0_i32 = arith.constant 0 : i32
    %c0_i32_0 = arith.constant 0 : i32
    %c0_i32_1 = arith.constant 0 : i32
    return %c0_i32, %c0_i32_0 : i32, i32
  }
  func.func @transform_5(%arg0: i32, %arg1: memref<3xi32, #tpu.memory_space<smem>>) -> (i32, i32, i32) {
    %0 = arith.index_cast %arg0 : i32 to index
    %1 = memref.load %arg1[%0] : memref<3xi32, #tpu.memory_space<smem>>
    %c0_i32 = arith.constant 0 : i32
    %c0_i32_0 = arith.constant 0 : i32
    %c0_i32_1 = arith.constant 0 : i32
    return %1, %c0_i32, %c0_i32_0 : i32, i32, i32
  }
  func.func @transform_6(%arg0: i32, %arg1: memref<3xi32, #tpu.memory_space<smem>>) -> (i32, i32, i32) {
    %0 = arith.index_cast %arg0 : i32 to index
    %1 = memref.load %arg1[%0] : memref<3xi32, #tpu.memory_space<smem>>
    %c0_i32 = arith.constant 0 : i32
    %c0_i32_0 = arith.constant 0 : i32
    %c0_i32_1 = arith.constant 0 : i32
    return %1, %c0_i32, %c0_i32_0 : i32, i32, i32
  }
  func.func @transform_7(%arg0: i32, %arg1: memref<3xi32, #tpu.memory_space<smem>>) -> (i32, i32, i32) {
    %0 = arith.index_cast %arg0 : i32 to index
    %1 = memref.load %arg1[%0] : memref<3xi32, #tpu.memory_space<smem>>
    %c0_i32 = arith.constant 0 : i32
    %c0_i32_0 = arith.constant 0 : i32
    %c0_i32_1 = arith.constant 0 : i32
    return %1, %c0_i32, %c0_i32_0 : i32, i32, i32
  }
  func.func @transform_8(%arg0: i32, %arg1: memref<3xi32, #tpu.memory_space<smem>>) -> (i32, i32, i32) {
    %0 = arith.index_cast %arg0 : i32 to index
    %1 = memref.load %arg1[%0] : memref<3xi32, #tpu.memory_space<smem>>
    %c0_i32 = arith.constant 0 : i32
    %c0_i32_0 = arith.constant 0 : i32
    %c0_i32_1 = arith.constant 0 : i32
    return %1, %c0_i32, %c0_i32_0 : i32, i32, i32
  }
  func.func @transform_9(%arg0: i32, %arg1: memref<3xi32, #tpu.memory_space<smem>>) -> (i32, i32, i32) {
    %c0_i32 = arith.constant 0 : i32
    %c0_i32_0 = arith.constant 0 : i32
    %c0_i32_1 = arith.constant 0 : i32
    return %arg0, %c0_i32, %c0_i32_0 : i32, i32, i32
  }
}

</mosaic_0001>

<bundles_post_ra>
// kernel: _forward_impl.1
= control target key start
LH: loop header
LB: loop body
LE: loop exit
PB: predicated region body
PF: predicated region fallthrough
CT: control target
= control target key end

     0   :  { %s690_s16 = smov [#allocation4]   ;;  %s833_s0 = inlined_call_operand.vmem [shape: s32[3], index: 0, kind: input, shape index: {}]   ;;  %s834_s1 = inlined_call_operand.vmem [shape: f32[8,16], index: 1, kind: input, shape index: {}]   ;;  %s835_s2 = inlined_call_operand.vmem [shape: f32[16,32], index: 2, kind: input, shape index: {}]   ;;  %s836_s3 = inlined_call_operand.vmem [shape: f32[1,32], index: 3, kind: input, shape index: {}]   ;;  %s837_s4 = inlined_call_operand.vmem [shape: f32[32,32], index: 4, kind: input, shape index: {}]   ;;  %s838_s5 = inlined_call_operand.vmem [shape: f32[1,32], index: 5, kind: input, shape index: {}]   ;;  %s839_s6 = inlined_call_operand.vmem [shape: f32[10,32,32], index: 6, kind: input, shape index: {}]   ;;  %s840_s7 = inlined_call_operand.vmem [shape: f32[10,1,32], index: 7, kind: input, shape index: {}]   ;;  %s841_s8 = inlined_call_operand.vmem [shape: f32[10,32,8], index: 8, kind: input, shape index: {}]   ;;  %s842_s9 = inlined_call_operand.vmem [shape: f32[10,1,8], index: 9, kind: input, shape index: {}]   ;;  %s843_s10 = inlined_call_operand.vmem [shape: f32[3,8,8], index: 10, kind: output, shape index: {}]  }
   0x1   :  { %s16_s15 = sshll.u32 %s833_s0, 4  ;;  %s17_s15 = int_to_ptr.vmem [resolvable:$true] %s16_s15 }
   0x2   :  { %19 = dma.vmem_to_smem %s17_s15, 16, %s690_s16, [#allocation3] }
   0x3   :  { %684 = dma.done.wait [#allocation3], 16 }
   0x4   :  { %685 = vsyncadd [#allocation3], 4294967280 }
   0x5   :  { %22 = sfence }
   0x6   :  { %s749_s17 = smov 0  }
   0x7 LB: > { %s636_s18 = sadd.s32 4294967295, %s688_s17   ;;  %p640_p0 = scmp.ge.s32.totalorder %s688_s17, 1  ;;  %s688_s17 = sphi %s749_s17, %s28_s17  }
   0x8   : > { %p338_p1 = scmp.lt.s32.totalorder %s688_s17, 4 }
   0xa   : > { %p339_p2 = pnand %p640_p0, %p338_p1 }
   0xb   : > { %s388_s0 = sld [smem:[#allocation4 + %s636_s18]] (!%p339_p2)  ;;  %p412_p3 = scmp.lt.s32.totalorder (!%p339_p2), %s636_s18, 2 }
   0xc   : > { %342 = sbr.rel (%p339_p2) target bundleno = 561 (0x231), region = 56  ;;  %s395_s19 = sld [smem:[#allocation4 + %s636_s18]] (!%p339_p2) }
   0xd   : > { %s400_s20 = sld [smem:[#allocation4 + %s636_s18]] (!%p339_p2)  ;;  %p646_p8 = scmp.ne.s32.totalorder (!%p339_p2), %s636_s18, 0 }
   0xe   : > { %s407_s22 = sld [smem:[#allocation4 + %s636_s18]] (!%p339_p2) }
  0x11   : > { %s413_s21 = scalar_select %p412_p3, %s636_s18, 2 }
  0x12   : > { %p389_p4 = scmp.lt.s32.totalorder %s388_s0, 9  ;;  %p396_p5 = scmp.lt.s32.totalorder %s395_s19, 9 }
  0x13   : > { %s645_s23 = sshll.u32 %s413_s21, 3  ;;  %p401_p6 = scmp.lt.s32.totalorder %s400_s20, 9 }
  0x14   : > { %s760_s26 = scalar_lea.vmem %s843_s10, %s645_s23  ;;  %s845_s0 = smov (!%p389_p4, %s388_s0), 9 }
  0x15   : > { %s847_s19 = smov (!%p396_p5, %s395_s19), 9  ;;  %s653_s27 = sshll.u32 %s845_s0, 5 }
  0x16   : > { %s767_s30 = scalar_lea.vmem %s839_s6, %s653_s27  ;;  %s398_s13 = scalar_lea.vmem %s840_s7, %s847_s19 }
  0x17   : > { %s849_s20 = smov (!%p401_p6, %s400_s20), 9  ;;  %p408_p7 = scmp.lt.s32.totalorder %s407_s22, 9 }
  0x18   : > { %s654_s14 = sshll.u32 %s849_s20, 5  ;;  %419 = sbr.rel (%p646_p8) target bundleno = 294 (0x126), region = 60 }
  0x19   : > { %s776_s21 = scalar_lea.vmem %s841_s8, %s654_s14  ;;  %s851_s22 = smov (!%p408_p7, %s407_s22), 9 }
  0x1a   : > { %s410_s24 = scalar_lea.vmem %s842_s9, %s851_s22 }
  0x1d   : > { %v422_v0 = vld [vmem:[%s835_s2 + $0x8] sm:$0xff]  ;;  %v421_v1 = vld [vmem:[%s835_s2] sm:$0xff]  ;;  %vm427_vm0 = vcmask 130048   ;;  %v455_v3 = vld [vmem:[%s837_s4 + $0x18] sm:$0xff]  ;;  %vm460_vm1 = vcmask 261120  }
  0x1e   : > { %445 = vmatpush.msra.mxu0 %v422_v0  ;;  %v420_v2 = vld [vmem:[%s834_s1] sm:$0xff]  ;;  %476 = vmatpush.msra.mxu1 %v455_v3  ;;  %v454_v4 = vld [vmem:[%s837_s4 + $0x10] sm:$0xff]  ;;  %v453_v5 = vld [vmem:[%s837_s4 + $0x8] sm:$0xff] }
  0x1f   : > { %v452_v6 = vld [vmem:[%s837_s4] sm:$0xff] }
  0x20   : > { %446 = vmatpush.msra.mxu0 %v421_v1  ;;  %477 = vmatpush.msra.mxu1 %v454_v4  ;;  %v664_v7 = vld [vmem:[%s836_s3] ss:$0 sm:$0xff] }
  0x21   : > { %647 = vmatmul.msk.f32.vlgmr.msra.gmra.mxu0 %vm427_vm0, %v420_v2  ;;  %v665_v11 = vld [vmem:[%s838_s5] ss:$0 sm:$0xff] }
  0x22   : > { %478 = vmatpush.msra.mxu1 %v453_v5 }
  0x24   : > { %479 = vmatpush.msra.mxu1 %v452_v6 }
  0x9e   : > { %v448_v8 = vpop.f32.mrf.mxu0 }
  0x9f   : > { %v449_v9 = vadd.f32 %v664_v7, %v448_v8 }
  0xa1   : > { %v451_v10 = vmax.f32 %v449_v9, 0.0 }
  0xa3   : > { %648 = vmatmul.msk.f32.vlgmr.msra.gmra.mxu1 %vm460_vm1, %v451_v10 }
 0x120   : > { %v481_v12 = vpop.f32.mrf.mxu1 }
 0x121   : > { %v482_v13 = vadd.f32 %v665_v11, %v481_v12 }
 0x123   : > { %v484_v14 = vmax.f32 %v482_v13, 0.0 }
 0x125   : > { %485 = vst.msk [vmem:[#allocation2] sm:$0xff] %vm460_vm1, %v484_v14 }
 0x126 PF: > { %v490_v15 = vld [vmem:[%s767_s30 + $0x18] sm:$0xff]  ;;  %v489_v16 = vld [vmem:[%s767_s30 + $0x10] sm:$0xff]  ;;  %v488_v18 = vld [vmem:[%s767_s30 + $0x8] sm:$0xff]  ;;  %vm495_vm2 = vcmask 261120   ;;  %vm551_vm3 = vcmask 64512  }
 0x127   : > { %511 = vmatpush.msra.mxu0 %v490_v15  ;;  %v523_v17 = vld [vmem:[%s776_s21 + $0x18] sm:$0xff]  ;;  %v487_v19 = vld [vmem:[%s767_s30] sm:$0xff]  ;;  %v522_v21 = vld [vmem:[%s776_s21 + $0x10] sm:$0xff] }
 0x128   : > { %543 = vmatpush.msra.mxu1 %v523_v17  ;;  %v521_v22 = vld [vmem:[%s776_s21 + $0x8] sm:$0xff]  ;;  %v520_v23 = vld [vmem:[%s776_s21] sm:$0xff] }
 0x129   : > { %512 = vmatpush.msra.mxu0 %v489_v16  ;;  %v666_v24 = vld [vmem:[%s398_s13] ss:$0 sm:$0xff] }
 0x12a   : > { %544 = vmatpush.msra.mxu1 %v522_v21  ;;  %v667_v28 = vld [vmem:[%s410_s24] ss:$0 sm:$0xff] }
 0x12b   : > { %513 = vmatpush.msra.mxu0 %v488_v18 }
 0x12c   : > { %v486_v20 = vld [vmem:[#allocation2] sm:$0xff]  ;;  %545 = vmatpush.msra.mxu1 %v521_v22 }
 0x12d   : > { %514 = vmatpush.msra.mxu0 %v487_v19 }
 0x12e   : > { %649 = vmatmul.msk.f32.vlgmr.msra.gmra.mxu0 %vm495_vm2, %v486_v20  ;;  %546 = vmatpush.msra.mxu1 %v520_v23 }
 0x1ab   : > { %v516_v25 = vpop.f32.mrf.mxu0 }
 0x1ac   : > { %v517_v26 = vadd.f32 %v666_v24, %v516_v25 }
 0x1ae   : > { %v519_v27 = vmax.f32 %v517_v26, 0.0 }
 0x1b0   : > { %650 = vmatmul.msk.f32.vlgmr.msra.gmra.mxu1 %vm495_vm2, %v519_v27 }
 0x22d   : > { %v548_v29 = vpop.f32.mrf.mxu1 }
 0x22e   : > { %v549_v30 = vadd.f32 %v667_v28, %v548_v29 }
 0x230   : > { %552 = vst.msk [vmem:[%s760_s26] sm:$0xff] %vm551_vm3, %v549_v30 }
 0x231 PF: > { %s28_s17 = sadd.s32 1, %s688_s17  }
 0x232   : > { %p25_p9 = scmp.ge.s32.totalorder %s28_s17, 5  }
 0x234   :  { %27 = sbr.rel (!%p25_p9) target bundleno = 7 (0x7), region = 99 }

</bundles_post_ra>
